<compile_context>
chip_gen: v5e
topology: v5e:2x2
jax: 0.10.0
libtpu: 0.0.40
codegen_flags: <defaults>
</compile_context>

<pallas_src>
import functools

import jax
import jax.numpy as jnp
from jax import lax
from jax.experimental import pallas as pl
from jax.experimental.pallas import tpu as pltpu


def _round_up(x, m):
    return ((x + m - 1) // m) * m


def _vmem_capacity_bytes():
    """Physical per-core VMEM, with a conservative (v7x-sized) fallback."""
    try:
        cap = getattr(pltpu.get_tpu_info(), "vmem_capacity_bytes", None)
        if cap:
            return int(cap)
    except Exception:
        pass
    return 64 << 20


def _sgc_kernel(x_ref, wt_ref, b_ref, ssf_ref, s_sq_ref,
                out_ref, h_ref, loss_ref, *, nclass, c_pad):
    # x_ref   : [tile_n, F]     f32  (row tile; cast to bf16 here, not in wrapper)
    # wt_ref  : [F, S_pad]      bf16 (W transposed, zero-padded columns)
    # b_ref   : [1, S_pad]      f32
    # ssf_ref : [S_pad, C_pad]  f32  (thresholded subspace filter)
    # s_sq_ref: [1, C_pad]      f32  (sum(ssf^2, axis=0), hoisted to wrapper)
    x = x_ref[...].astype(jnp.bfloat16)          # in-kernel cast -> bf16 MXU feed
    wt = wt_ref[...]

    # Linear + ReLU (bf16 MXU matmul, f32 accumulate; padded cols give 0).
    h = jnp.dot(x, wt, preferred_element_type=jnp.float32) + b_ref[...]
    h = jnp.maximum(h, 0.0)
    h_ref[...] = h

    # out = h @ ssf; reused as the dot products for the cdist / cosine terms.
    # Kept in f32 to avoid cancellation in h_sq + s_sq - 2*dots.
    dots = jnp.dot(h, ssf_ref[...], preferred_element_type=jnp.float32)
    out_ref[...] = dots

    # spatial_dist = -cdist(h, ssf.T, p=2)
    h_sq = jnp.sum(h * h, axis=1, keepdims=True)              # [tile_n, 1]
    s_sq = s_sq_ref[...]                                       # [1, C_pad]
    dist2 = jnp.maximum(h_sq + s_sq - 2.0 * dots, 0.0)
    spatial_dist = -jnp.sqrt(dist2)

    # Cosine similarity (torch: dot / max(||a||*||b||, 1e-6)); exact divide.
    denom = jnp.maximum(jnp.sqrt(h_sq) * jnp.sqrt(s_sq), 1e-6)
    spatial_sim = dots / denom

    if c_pad > nclass:  # static: mask padded class columns out of the softmax
        col = lax.broadcasted_iota(jnp.int32, dots.shape, 1)
        pad_mask = col >= nclass
    else:
        pad_mask = None

    def log_softmax(z):
        if pad_mask is not None:
            z = jnp.where(pad_mask, -jnp.inf, z)
        m = jnp.max(z, axis=1, keepdims=True)
        zz = z - m
        return zz - jnp.log(jnp.sum(jnp.exp(zz), axis=1, keepdims=True))

    loss_ref[...] = 0.5 * (log_softmax(spatial_dist) + log_softmax(spatial_sim))


def sgc_forward(x, W, b, subspace_filter, sigma, sp_rate, dataset="cora",
                tile_n=None):
    """Returns (out, ssf, x_hidden, spatial_loss, sigma), mirroring SGC.forward."""
    # --- sparsity thresholding of the subspace filter (glue, stays in JAX) ---
    flat = jnp.abs(subspace_filter).reshape(-1)
    sorted_w = jnp.sort(flat)
    filter_idx = min(round(flat.shape[0] * sp_rate), flat.shape[0] - 1)  # clamp
    threshold_value = sorted_w[filter_idx]
    ssf = jnp.where(jnp.abs(subspace_filter) >= threshold_value,
                    subspace_filter, 0.0).astype(jnp.float32)

    if x.dtype != jnp.float32:
        x = x.astype(jnp.float32)

    N, F = x.shape
    S, C = ssf.shape

    # Small S / C axes: pad only to 8 for the HBM-facing outputs.  The block
    # last dim equals the full array dim, so narrow stores are legal and the
    # output writeback bytes drop ~12x vs 128-lane padding.
    S_pad = _round_up(S, 8)
    C_pad = _round_up(C, 8)

    wt_p = jnp.zeros((F, S_pad), jnp.float32).at[:, :S].set(
        W.T.astype(jnp.float32)).astype(jnp.bfloat16)
    b_p = jnp.zeros((1, S_pad), jnp.float32).at[:, :S].set(
        b.reshape(1, S).astype(jnp.float32))
    ssf_p = jnp.zeros((S_pad, C_pad), jnp.float32).at[:S, :C].set(ssf)
    s_sq = jnp.sum(ssf_p * ssf_p, axis=0, keepdims=True)        # [1, C_pad]

    # --- per-generation tiling / VMEM sizing --------------------------------
    vmem_cap = _vmem_capacity_bytes()
    if tile_n is None:
        tile_n = 1024 if vmem_cap >= (100 << 20) else 512   # v5e/v6e vs v7x
    tile_n = _round_up(max(8, min(tile_n, _round_up(N, 8))), 8)

    cap = (vmem_cap * 3) // 4   # leave headroom for compiler scratch/semaphores

    def _budget(t):
        # x buffers (f32) + resident bf16 W^T + output/intermediate tiles
        # (lane-padded to 128 in VMEM) + headroom.
        return (3 * t * F * 4
                + 2 * F * max(S_pad, 128) * 2
                + 8 * t * 128 * 4
                + (8 << 20))

    while tile_n > 8 and _budget(tile_n) > cap:
        tile_n = max(8, _round_up(tile_n // 2, 8))

    steps = pl.cdiv(N, tile_n)
    if vmem_cap < (100 << 20) and steps > 1 and steps % 2 == 1:
        # v7x megacore: even step count so the 'parallel' row axis splits 2-way.
        tile_n = _round_up(pl.cdiv(N, steps + 1), 8)
        steps = pl.cdiv(N, tile_n)
    grid = (steps,)

    vmem_limit = int(min(max(_budget(tile_n), 32 << 20), cap))

    row = lambda i: (i, 0)     # row-tiled arrays
    const = lambda i: (0, 0)   # VMEM-resident parameters (fetched once)

    in_specs = [
        pl.BlockSpec((tile_n, F), row),        # x (f32; cast in-kernel)
        pl.BlockSpec((F, S_pad), const),       # W^T (bf16)
        pl.BlockSpec((1, S_pad), const),       # b
        pl.BlockSpec((S_pad, C_pad), const),   # ssf
        pl.BlockSpec((1, C_pad), const),       # s_sq
    ]
    out_specs = (
        pl.BlockSpec((tile_n, C_pad), row),    # out = h @ ssf
        pl.BlockSpec((tile_n, S_pad), row),    # h = relu(Wx + b)
        pl.BlockSpec((tile_n, C_pad), row),    # spatial_loss
    )

    cost = pl.CostEstimate(
        flops=int(2 * N * F * S_pad + 2 * N * S_pad * C_pad + 12 * N * C_pad),
        transcendentals=int(4 * N * C_pad),
        bytes_accessed=int(N * F * 4 + F * S_pad * 2 + S_pad * C_pad * 4
                           + N * (S_pad + 2 * C_pad) * 4),
    )

    out_p, h_p, loss_p = pl.pallas_call(
        functools.partial(_sgc_kernel, nclass=C, c_pad=C_pad),
        out_shape=(
            jax.ShapeDtypeStruct((N, C_pad), jnp.float32),   # out = h @ ssf
            jax.ShapeDtypeStruct((N, S_pad), jnp.float32),   # relu(Wx + b)
            jax.ShapeDtypeStruct((N, C_pad), jnp.float32),   # spatial_loss
        ),
        grid=grid,
        in_specs=in_specs,
        out_specs=out_specs,
        compiler_params=pltpu.CompilerParams(
            dimension_semantics=("parallel",),
            vmem_limit_bytes=vmem_limit),
        cost_estimate=cost,
    )(x, wt_p, b_p, ssf_p, s_sq)

    out = out_p[:, :C]
    h = h_p[:, :S]
    spatial_loss = loss_p[:, :C]

    # TODO(synk): the 'facebook' / 'mag_*' branch (sigmoid + per-subspace
    # pairwise distance + .cuda()) is not implemented; only the default path is.
    return out, ssf, h, spatial_loss, sigma


if __name__ == "__main__":
    key = jax.random.PRNGKey(0)
    N, nfeat, nssf, nclass = 8, 32, 16, 4
    sp_rate = 0.5

    k1, k2, k3, k4 = jax.random.split(key, 4)
    x = jax.random.normal(k1, (N, nfeat), jnp.float32)
    # Deterministic synthetic parameters (shapes match nn.Linear(nfeat, nssf),
    # subspace_filter (nssf, nclass), sigma = ones(2)).
    W = jax.random.normal(k2, (nssf, nfeat), jnp.float32) / jnp.sqrt(float(nfeat))
    b = jax.random.normal(k3, (nssf,), jnp.float32) * 0.01
    subspace_filter = jax.random.normal(k4, (nssf, nclass), jnp.float32)
    sigma = jnp.ones((2,), jnp.float32)

    out, ssf, h, spatial_loss, sig = sgc_forward(
        x, W, b, subspace_filter, sigma, sp_rate, dataset="cora")
    jax.block_until_ready((out, ssf, h, spatial_loss, sig))

    assert out.shape == (N, nclass)
    assert ssf.shape == (nssf, nclass)
    assert h.shape == (N, nssf)
    assert spatial_loss.shape == (N, nclass)
    assert sig.shape == (2,)
    assert bool(jnp.all(jnp.isfinite(out)))
    assert bool(jnp.all(jnp.isfinite(h)))
    assert bool(jnp.all(jnp.isfinite(spatial_loss)))
    print("KERNEL_OK")
</pallas_src>

<mosaic_0001>
module attributes {stable_mosaic.version = 11 : i64} {
  func.func @_sgc_kernel(%arg0: i32, %arg1: memref<8x32xf32, #tpu.memory_space<vmem>>, %arg2: memref<32x16xbf16, #tpu.memory_space<vmem>>, %arg3: memref<1x16xf32, #tpu.memory_space<vmem>>, %arg4: memref<16x8xf32, #tpu.memory_space<vmem>>, %arg5: memref<1x8xf32, #tpu.memory_space<vmem>>, %arg6: memref<8x8xf32, #tpu.memory_space<vmem>>, %arg7: memref<8x16xf32, #tpu.memory_space<vmem>>, %arg8: memref<8x8xf32, #tpu.memory_space<vmem>>) attributes {dimension_semantics = [#tpu.dimension_semantics<parallel>], iteration_bounds = array<i64: 1>, scalar_prefetch = 0 : i64, scratch_operands = 0 : i64, tpu.core_type = #tpu.core_type<tc>, window_params = [{transform_indices = @transform_0, window_bounds = array<i64: 8, 32>}, {pipeline_mode = #tpu.pipeline_mode<synchronous>, transform_indices = @transform_1, window_bounds = array<i64: 32, 16>}, {pipeline_mode = #tpu.pipeline_mode<synchronous>, transform_indices = @transform_2, window_bounds = array<i64: 1, 16>}, {pipeline_mode = #tpu.pipeline_mode<synchronous>, transform_indices = @transform_3, window_bounds = array<i64: 16, 8>}, {pipeline_mode = #tpu.pipeline_mode<synchronous>, transform_indices = @transform_4, window_bounds = array<i64: 1, 8>}, {transform_indices = @transform_5, window_bounds = array<i64: 8, 8>}, {transform_indices = @transform_6, window_bounds = array<i64: 8, 16>}, {transform_indices = @transform_7, window_bounds = array<i64: 8, 8>}]} {
    %c0 = arith.constant 0 : index
    %c0_0 = arith.constant 0 : index
    %0 = vector.load %arg1[%c0, %c0_0] : memref<8x32xf32, #tpu.memory_space<vmem>>, vector<8x32xf32>
    %1 = arith.truncf %0 : vector<8x32xf32> to vector<8x32xbf16>
    %c0_1 = arith.constant 0 : index
    %c0_2 = arith.constant 0 : index
    %2 = vector.load %arg2[%c0_1, %c0_2] : memref<32x16xbf16, #tpu.memory_space<vmem>>, vector<32x16xbf16>
    %cst = arith.constant dense<0.000000e+00> : vector<8x16xf32>
    %3 = tpu.matmul %1, %2, %cst {dimension_numbers = #tpu.dot_dimension_numbers<[1], [0], [0], [1], [0, 0, 1, 1], [], []>} : vector<8x32xbf16>, vector<32x16xbf16>, vector<8x16xf32> -> vector<8x16xf32>
    %c0_3 = arith.constant 0 : index
    %c0_4 = arith.constant 0 : index
    %4 = vector.load %arg3[%c0_3, %c0_4] : memref<1x16xf32, #tpu.memory_space<vmem>>, vector<1x16xf32>
    %5 = vector.broadcast %4 : vector<1x16xf32> to vector<8x16xf32>
    %6 = arith.addf %3, %5 : vector<8x16xf32>
    %cst_5 = arith.constant 0.000000e+00 : f32
    %7 = vector.broadcast %cst_5 : f32 to vector<8x16xf32>
    %8 = arith.maximumf %6, %7 : vector<8x16xf32>
    %c0_6 = arith.constant 0 : index
    %c0_7 = arith.constant 0 : index
    %9 = vector.load %arg7[%c0_6, %c0_7] : memref<8x16xf32, #tpu.memory_space<vmem>>, vector<8x16xf32>
    tpu.vector_store %arg7[%c0_6, %c0_7], %8 {strides = array<i32>} : memref<8x16xf32, #tpu.memory_space<vmem>>, vector<8x16xf32>,
    %c0_8 = arith.constant 0 : index
    %c0_9 = arith.constant 0 : index
    %10 = vector.load %arg4[%c0_8, %c0_9] : memref<16x8xf32, #tpu.memory_space<vmem>>, vector<16x8xf32>
    %cst_10 = arith.constant dense<0.000000e+00> : vector<8x8xf32>
    %11 = tpu.matmul %8, %10, %cst_10 {dimension_numbers = #tpu.dot_dimension_numbers<[1], [0], [0], [1], [0, 0, 1, 1], [], []>} : vector<8x16xf32>, vector<16x8xf32>, vector<8x8xf32> -> vector<8x8xf32>
    %c0_11 = arith.constant 0 : index
    %c0_12 = arith.constant 0 : index
    %12 = vector.load %arg6[%c0_11, %c0_12] : memref<8x8xf32, #tpu.memory_space<vmem>>, vector<8x8xf32>
    tpu.vector_store %arg6[%c0_11, %c0_12], %11 {strides = array<i32>} : memref<8x8xf32, #tpu.memory_space<vmem>>, vector<8x8xf32>,
    %13 = arith.mulf %8, %8 : vector<8x16xf32>
    %cst_13 = arith.constant dense<0.000000e+00> : vector<8xf32>
    %14 = vector.multi_reduction <add>, %13, %cst_13 [1] : vector<8x16xf32> to vector<8xf32>
    %15 = vector.shape_cast %14 : vector<8xf32> to vector<8x1xf32>
    %c0_14 = arith.constant 0 : index
    %c0_15 = arith.constant 0 : index
    %16 = vector.load %arg5[%c0_14, %c0_15] : memref<1x8xf32, #tpu.memory_space<vmem>>, vector<1x8xf32>
    %17 = vector.broadcast %15 : vector<8x1xf32> to vector<8x8xf32>
    %18 = vector.broadcast %16 : vector<1x8xf32> to vector<8x8xf32>
    %19 = arith.addf %17, %18 : vector<8x8xf32>
    %cst_16 = arith.constant 2.000000e+00 : f32
    %20 = vector.broadcast %cst_16 : f32 to vector<8x8xf32>
    %21 = arith.mulf %20, %11 : vector<8x8xf32>
    %22 = arith.subf %19, %21 : vector<8x8xf32>
    %cst_17 = arith.constant 0.000000e+00 : f32
    %23 = vector.broadcast %cst_17 : f32 to vector<8x8xf32>
    %24 = arith.maximumf %22, %23 : vector<8x8xf32>
    %25 = math.sqrt %24 : vector<8x8xf32>
    %cst_18 = arith.constant 0.000000e+00 : f32
    %26 = vector.broadcast %cst_18 : f32 to vector<8x8xf32>
    %27 = arith.subf %26, %25 : vector<8x8xf32>
    %28 = math.sqrt %15 : vector<8x1xf32>
    %29 = math.sqrt %16 : vector<1x8xf32>
    %30 = vector.broadcast %28 : vector<8x1xf32> to vector<8x8xf32>
    %31 = vector.broadcast %29 : vector<1x8xf32> to vector<8x8xf32>
    %32 = arith.mulf %30, %31 : vector<8x8xf32>
    %cst_19 = arith.constant 9.99999997E-7 : f32
    %33 = vector.broadcast %cst_19 : f32 to vector<8x8xf32>
    %34 = arith.maximumf %32, %33 : vector<8x8xf32>
    %35 = arith.divf %11, %34 : vector<8x8xf32>
    %36 = tpu.iota {dimensions = array<i32: 1>} : vector<8x8xi32>
    %c4_i32 = arith.constant 4 : i32
    %37 = vector.broadcast %c4_i32 : i32 to vector<8x8xi32>
    %38 = arith.cmpi sge, %36, %37 : vector<8x8xi32>
    %cst_20 = arith.constant 0xFF800000 : f32
    %39 = vector.broadcast %cst_20 : f32 to vector<8x8xf32>
    %40 = arith.select %38, %39, %27 : vector<8x8xi1>, vector<8x8xf32>
    %cst_21 = arith.constant dense<0xFF800000> : vector<8xf32>
    %41 = vector.multi_reduction <maximumf>, %40, %cst_21 [1] : vector<8x8xf32> to vector<8xf32>
    %42 = vector.shape_cast %41 : vector<8xf32> to vector<8x1xf32>
    %43 = vector.broadcast %42 : vector<8x1xf32> to vector<8x8xf32>
    %44 = arith.subf %40, %43 : vector<8x8xf32>
    %45 = math.exp %44 : vector<8x8xf32>
    %cst_22 = arith.constant dense<0.000000e+00> : vector<8xf32>
    %46 = vector.multi_reduction <add>, %45, %cst_22 [1] : vector<8x8xf32> to vector<8xf32>
    %47 = vector.shape_cast %46 : vector<8xf32> to vector<8x1xf32>
    %48 = math.log %47 : vector<8x1xf32>
    %49 = vector.broadcast %48 : vector<8x1xf32> to vector<8x8xf32>
    %50 = arith.subf %44, %49 : vector<8x8xf32>
    %cst_23 = arith.constant 0xFF800000 : f32
    %51 = vector.broadcast %cst_23 : f32 to vector<8x8xf32>
    %52 = arith.select %38, %51, %35 : vector<8x8xi1>, vector<8x8xf32>
    %cst_24 = arith.constant dense<0xFF800000> : vector<8xf32>
    %53 = vector.multi_reduction <maximumf>, %52, %cst_24 [1] : vector<8x8xf32> to vector<8xf32>
    %54 = vector.shape_cast %53 : vector<8xf32> to vector<8x1xf32>
    %55 = vector.broadcast %54 : vector<8x1xf32> to vector<8x8xf32>
    %56 = arith.subf %52, %55 : vector<8x8xf32>
    %57 = math.exp %56 : vector<8x8xf32>
    %cst_25 = arith.constant dense<0.000000e+00> : vector<8xf32>
    %58 = vector.multi_reduction <add>, %57, %cst_25 [1] : vector<8x8xf32> to vector<8xf32>
    %59 = vector.shape_cast %58 : vector<8xf32> to vector<8x1xf32>
    %60 = math.log %59 : vector<8x1xf32>
    %61 = vector.broadcast %60 : vector<8x1xf32> to vector<8x8xf32>
    %62 = arith.subf %56, %61 : vector<8x8xf32>
    %63 = arith.addf %50, %62 : vector<8x8xf32>
    %cst_26 = arith.constant 5.000000e-01 : f32
    %64 = vector.broadcast %cst_26 : f32 to vector<8x8xf32>
    %65 = arith.mulf %64, %63 : vector<8x8xf32>
    %c0_27 = arith.constant 0 : index
    %c0_28 = arith.constant 0 : index
    %66 = vector.load %arg8[%c0_27, %c0_28] : memref<8x8xf32, #tpu.memory_space<vmem>>, vector<8x8xf32>
    tpu.vector_store %arg8[%c0_27, %c0_28], %65 {strides = array<i32>} : memref<8x8xf32, #tpu.memory_space<vmem>>, vector<8x8xf32>,
    return
  }
  func.func @transform_0(%arg0: i32) -> (i32, i32) {
    %c0_i32 = arith.constant 0 : i32
    %c0_i32_0 = arith.constant 0 : i32
    return %arg0, %c0_i32 : i32, i32
  }
  func.func @transform_1(%arg0: i32) -> (i32, i32) {
    %c0_i32 = arith.constant 0 : i32
    %c0_i32_0 = arith.constant 0 : i32
    %c0_i32_1 = arith.constant 0 : i32
    return %c0_i32, %c0_i32_0 : i32, i32
  }
  func.func @transform_2(%arg0: i32) -> (i32, i32) {
    %c0_i32 = arith.constant 0 : i32
    %c0_i32_0 = arith.constant 0 : i32
    %c0_i32_1 = arith.constant 0 : i32
    return %c0_i32, %c0_i32_0 : i32, i32
  }
  func.func @transform_3(%arg0: i32) -> (i32, i32) {
    %c0_i32 = arith.constant 0 : i32
    %c0_i32_0 = arith.constant 0 : i32
    %c0_i32_1 = arith.constant 0 : i32
    return %c0_i32, %c0_i32_0 : i32, i32
  }
  func.func @transform_4(%arg0: i32) -> (i32, i32) {
    %c0_i32 = arith.constant 0 : i32
    %c0_i32_0 = arith.constant 0 : i32
    %c0_i32_1 = arith.constant 0 : i32
    return %c0_i32, %c0_i32_0 : i32, i32
  }
  func.func @transform_5(%arg0: i32) -> (i32, i32) {
    %c0_i32 = arith.constant 0 : i32
    %c0_i32_0 = arith.constant 0 : i32
    return %arg0, %c0_i32 : i32, i32
  }
  func.func @transform_6(%arg0: i32) -> (i32, i32) {
    %c0_i32 = arith.constant 0 : i32
    %c0_i32_0 = arith.constant 0 : i32
    return %arg0, %c0_i32 : i32, i32
  }
  func.func @transform_7(%arg0: i32) -> (i32, i32) {
    %c0_i32 = arith.constant 0 : i32
    %c0_i32_0 = arith.constant 0 : i32
    return %arg0, %c0_i32 : i32, i32
  }
}

</mosaic_0001>

<bundles_post_ra>
// kernel: tpu_custom_call.1
= control target key start
LH: loop header
LB: loop body
LE: loop exit
PB: predicated region body
PF: predicated region fallthrough
CT: control target
= control target key end

     0   :  { %13 = vsyncpa [#allocation3], 0  ;;  %s436_s0 = inlined_call_operand.vmem [shape: f32[8,32], index: 0, kind: input, shape index: {}]   ;;  %s437_s1 = inlined_call_operand.vmem [shape: bf16[32,16], index: 1, kind: input, shape index: {}]   ;;  %s438_s2 = inlined_call_operand.vmem [shape: f32[1,16], index: 2, kind: input, shape index: {}]   ;;  %s439_s3 = inlined_call_operand.vmem [shape: f32[16,8], index: 3, kind: input, shape index: {}]   ;;  %s440_s4 = inlined_call_operand.vmem [shape: f32[1,8], index: 4, kind: input, shape index: {}]   ;;  %s441_s5 = inlined_call_operand.hbm [shape: f32[8,8], index: 5, kind: output, shape index: {0}]   ;;  %s442_s6 = inlined_call_operand.hbm [shape: f32[8,16], index: 6, kind: output, shape index: {1}]   ;;  %s443_s7 = inlined_call_operand.hbm [shape: f32[8,8], index: 7, kind: output, shape index: {2}]  }
   0x1   :  { %v254_v0 = vld [vmem:[%s437_s1 + $0x8] sm:$0xff] }
   0x2   :  { %14 = vsyncpa [#allocation5], 0  ;;  %58 = vmatpush.bf16.msra.mxu0 %v254_v0  ;;  %v253_v1 = vld [vmem:[%s437_s1] sm:$0xff]  ;;  %vm48_vm0 = vcmask 261120   ;;  %v69_v4 = vld [vmem:[%s439_s3 + $0x8] sm:$0xff]  ;;  %vm66_vm1 = vcmask 130048   ;;  %v164_v48 = vlaneseq }
   0x3   :  { %v26_v2 = vld [vmem:[%s436_s0] sm:$0xff]  ;;  %87 = vmatpush.msra.mxu1 %v69_v4  ;;  %vm93_vm2 = vcmask 64512   ;;  %s214_s14 = sshll.u32 %s442_s6, 4  ;;  %s352_s15 = smov [#allocation4]   ;;  %s215_s14 = int_to_ptr.hbm [resolvable:$true] %s214_s14 }
   0x4   :  { %v27_v3 = vpack.c.bf16 %v26_v2, %v26_v2  ;;  %v68_v5 = vld [vmem:[%s439_s3] sm:$0xff]  ;;  %v165_v51 = vand.u32 127, %v164_v48  ;;  %s212_s16 = sshll.u32 %s352_s15, 4  ;;  %s353_s17 = smov [#allocation2]   ;;  %s213_s16 = int_to_ptr.vmem [resolvable:$true] %s212_s16 }
   0x5   :  { %88 = vmatpush.msra.mxu1 %v68_v5  ;;  %v258_v6 = vld [vmem:[%s438_s2] ss:$0 sm:$0xff]  ;;  %s201_s18 = sshll.u32 %s353_s17, 4  ;;  %s203_s21 = sshll.u32 %s441_s5, 4  ;;  %s202_s18 = int_to_ptr.vmem [resolvable:$true] %s201_s18  ;;  %s204_s21 = int_to_ptr.hbm [resolvable:$true] %s203_s21 }
   0x6   :  { %59 = vmatpush.bf16.msra.mxu0 %v253_v1  ;;  %v99_v13 = vld [vmem:[%s440_s4] sm:$0x1]  ;;  %vm166_vm9 = vcmp.ge.s32.totalorder %v165_v51, 4  ;;  %s354_s6 = smov [#allocation6]   ;;  %s225_s25 = sshll.u32 %s443_s7, 4  ;;  %s226_s25 = int_to_ptr.hbm [resolvable:$true] %s225_s25 }
   0x7   :  { %260 = vrsqrt.f32 %v99_v13  ;;  %v259_v20 = vld [vmem:[%s440_s4] ss:$0 sm:$0xff]  ;;  %vm139_vm3 = vcmp.eq.f32.partialorder %v99_v13, inf  ;;  %v142_v30 = vand.u32 2147483648, %v99_v13  ;;  %vm141_vm4 = vcmp.eq.f32.partialorder %v99_v13, 0.0  ;;  %s223_s22 = sshll.u32 %s354_s6, 4  ;;  %s224_s22 = int_to_ptr.vmem [resolvable:$true] %s223_s22 }
   0x9   :  { %251 = vmatmul.msk.bf16.vlgmr.msra.gmra.mxu0 %vm48_vm0, %v27_v3 }
   0xd   :  { %v261_v14 = vpop.eup %260 }
   0xe   :  { %v133_v15 = vmul.f32 %v261_v14, %v99_v13 }
  0x10   :  { %v134_v16 = vmul.f32 %v261_v14, %v133_v15 }
  0x12   :  { %v135_v17 = vmul.f32 0.5, %v134_v16 }
  0x14   :  { %v136_v19 = vsub.f32 1.5, %v135_v17 }
  0x16   :  { %v137_v21 = vmul.f32 %v261_v14, %v136_v19 }
  0x18   :  { %v138_v27 = vmul.f32 %v137_v21, %v99_v13 }
  0x1a   :  { %v140_v33 = vsel %vm139_vm3, %v99_v13, %v138_v27 }
  0x1b   :  { %v143_v35 = vsel %vm141_vm4, %v142_v30, %v140_v33 }
  0x1c   :  { %v145_v38 = vperm.slane %v143_v35, 0 }
  0x86   :  { %v61_v7 = vpop.f32.mrf.mxu0 }
  0x87   :  { %v62_v8 = vadd.f32 %v258_v6, %v61_v7 }
  0x89   :  { %v65_v9 = vmax.f32 %v62_v8, 0.0 }
  0x8b   :  { %252 = vmatmul.msk.f32.vlgmr.msra.gmra.mxu1 %vm66_vm1, %v65_v9  ;;  %67 = vst.msk [vmem:[#allocation4] sm:$0xff] %vm66_vm1, %v65_v9  ;;  %v95_v10 = vmul.f32 %v65_v9, %v65_v9 }
  0x8c   :  { %217 = dma.vmem_to_hbm [thread:$0]  %s213_s16, 128, %s215_s14, [#allocation5]  }
  0x8d   :  { %v96_v11 = vsel %vm66_vm1, %v95_v10, 0.0 }
  0x8e   :  { %v63_v12 = vpop.f32.mrf.mxu0  ;;  %97 = vadd.xlane.f32.xlu0 %v96_v11 }
 0x101   :  { %v98_v18 = vpop.xlane.xlu0 %97 }
 0x102   :  { %262 = vrsqrt.f32 %v98_v18  ;;  %v103_v25 = vadd.f32 %v259_v20, %v98_v18  ;;  %vm127_vm5 = vcmp.eq.f32.partialorder %v98_v18, inf  ;;  %v130_v39 = vand.u32 2147483648, %v98_v18 }
 0x103   :  { %vm129_vm6 = vcmp.eq.f32.partialorder %v98_v18, 0.0 }
 0x108   :  { %v263_v22 = vpop.eup %262  ;;  %v90_v23 = vpop.f32.mrf.mxu1 }
 0x109   :  { %v121_v24 = vmul.f32 %v263_v22, %v98_v18  ;;  %v104_v26 = vmul.f32 2.0, %v90_v23  ;;  %94 = vst.msk [vmem:[#allocation2] sm:$0xff] %vm93_vm2, %v90_v23 }
 0x10a   :  { %206 = dma.vmem_to_hbm [thread:$0]  %s202_s18, 128, %s204_s21, [#allocation3]  }
 0x10b   :  { %v122_v28 = vmul.f32 %v263_v22, %v121_v24  ;;  %v105_v29 = vsub.f32 %v103_v25, %v104_v26 }
 0x10d   :  { %v123_v31 = vmul.f32 0.5, %v122_v28  ;;  %v106_v32 = vmax.f32 %v105_v29, 0.0 }
 0x10f   :  { %v124_v34 = vsub.f32 1.5, %v123_v31  ;;  %264 = vrsqrt.f32 %v106_v32  ;;  %vm114_vm7 = vcmp.eq.f32.partialorder %v106_v32, inf  ;;  %v117_v54 = vand.u32 2147483648, %v106_v32 }
 0x110   :  { %vm116_vm8 = vcmp.eq.f32.partialorder %v106_v32, 0.0 }
 0x111   :  { %v125_v36 = vmul.f32 %v263_v22, %v124_v34 }
 0x113   :  { %v126_v37 = vmul.f32 %v125_v36, %v98_v18 }
 0x115   :  { %v265_v40 = vpop.eup %264  ;;  %v128_v41 = vsel %vm127_vm5, %v98_v18, %v126_v37 }
 0x116   :  { %v131_v42 = vsel %vm129_vm6, %v130_v39, %v128_v41  ;;  %v108_v43 = vmul.f32 %v265_v40, %v106_v32 }
 0x117   :  { %v147_v44 = vmul.f32 %v145_v38, %v131_v42 }
 0x118   :  { %v109_v45 = vmul.f32 %v265_v40, %v108_v43 }
 0x119   :  { %v148_v46 = vmax.f32 %v147_v44, 1e-06 }
 0x11a   :  { %v110_v47 = vmul.f32 0.5, %v109_v45 }
 0x11b   :  { %266 = vrcp.f32 %v148_v46  ;;  %v160_v60 = vand.u32 2147483648, %v148_v46  ;;  %v158_v62 = vand.u32 2147483647, %v148_v46  ;;  %vm154_vm11 = vweird.f32 %v148_v46 }
 0x11c   :  { %v111_v49 = vsub.f32 1.5, %v110_v47 }
 0x11d   :  { %v161_v2 = vor.u32 1.1754944e-38, %v160_v60  ;;  %vm159_vm13 = vcmp.eq.f32.partialorder %v158_v62, 8.507059e+37 }
 0x11e   :  { %v112_v50 = vmul.f32 %v265_v40, %v111_v49 }
 0x120   :  { %v113_v52 = vmul.f32 %v112_v50, %v106_v32 }
 0x121   :  { %v267_v53 = vpop.eup %266 }
 0x122   :  { %v150_v55 = vmul.f32 %v267_v53, %v148_v46  ;;  %v115_v56 = vsel %vm114_vm7, %v106_v32, %v113_v52  ;;  %vm155_vm10 = vweird.f32 %v267_v53 }
 0x123   :  { %v118_v57 = vsel %vm116_vm8, %v117_v54, %v115_v56  ;;  %vm156_vm12 = vmor %vm154_vm11, %vm155_vm10 }
 0x124   :  { %v151_v58 = vsub.f32 1.0, %v150_v55  ;;  %v119_v59 = vsub.f32 0.0, %v118_v57 }
 0x126   :  { %v152_v61 = vmul.f32 %v267_v53, %v151_v58  ;;  %v167_v63 = vsel %vm166_vm9, -inf, %v119_v59 }
 0x127   :  { %v168_v0 = vsel %vm93_vm2, %v167_v63, -inf }
 0x128   :  { %v153_v1 = vadd.f32 %v267_v53, %v152_v61  ;;  %169 = vmax.xlane.f32.xlu0 %v168_v0 }
 0x12a   :  { %v157_v3 = vsel %vm156_vm12, %v267_v53, %v153_v1 }
 0x12b   :  { %v162_v4 = vsel %vm159_vm13, %v161_v2, %v157_v3 }
 0x12c   :  { %v163_v5 = vmul.f32 %v162_v4, %v90_v23 }
 0x12e   :  { %v180_v6 = vsel %vm166_vm9, -inf, %v163_v5 }
 0x12f   :  { %v181_v7 = vsel %vm93_vm2, %v180_v6, -inf }
 0x130   :  { %182 = vmax.xlane.f32.xlu1 %v181_v7 }
 0x19b   :  { %v170_v8 = vpop.xlane.xlu0 %169 }
 0x19c   :  { %v171_v9 = vsub.f32 %v167_v63, %v170_v8 }
 0x19e   :  { %v172_v10 = vmul.f32 1.442695, %v171_v9 }
 0x1a0   :  { %268 = vpow2.f32 %v172_v10 }
 0x1a3   :  { %v183_v11 = vpop.xlane.xlu1 %182 }
 0x1a4   :  { %v184_v12 = vsub.f32 %v180_v6, %v183_v11 }
 0x1a6   :  { %v269_v13 = vpop.eup %268  ;;  %v185_v14 = vmul.f32 1.442695, %v184_v12 }
 0x1a7   :  { %v174_v15 = vsel %vm93_vm2, %v269_v13, 0.0 }
 0x1a8   :  { %270 = vpow2.f32 %v185_v14  ;;  %175 = vadd.xlane.f32.xlu1 %v174_v15 }
 0x1ae   :  { %v271_v16 = vpop.eup %270 }
 0x1af   :  { %v187_v17 = vsel %vm93_vm2, %v271_v16, 0.0 }
 0x1b0   :  { %188 = vadd.xlane.f32.xlu2 %v187_v17 }
 0x21b   :  { %v176_v18 = vpop.xlane.xlu1 %175 }
 0x21c   :  { %272 = vlog2.f32 %v176_v18 }
 0x222   :  { %v273_v20 = vpop.eup %272 }
 0x223   :  { %v189_v19 = vpop.xlane.xlu2 %188  ;;  %v178_v21 = vmul.f32 0.6931472, %v273_v20 }
 0x224   :  { %274 = vlog2.f32 %v189_v19 }
 0x225   :  { %v179_v24 = vsub.f32 %v171_v9, %v178_v21 }
 0x22a   :  { %v275_v22 = vpop.eup %274 }
 0x22b   :  { %v191_v23 = vmul.f32 0.6931472, %v275_v22 }
 0x22d   :  { %v192_v25 = vsub.f32 %v184_v12, %v191_v23 }
 0x22f   :  { %v193_v26 = vadd.f32 %v192_v25, %v179_v24 }
 0x231   :  { %v194_v27 = vmul.f32 0.5, %v193_v26 }
 0x233   :  { %195 = vst.msk [vmem:[#allocation6] sm:$0xff] %vm93_vm2, %v194_v27 }
 0x234   :  { %228 = dma.vmem_to_hbm [thread:$0]  %s224_s22, 128, %s226_s25, [#allocation5]  }
 0x235   :  { %348 = dma.done.wait [#allocation3], 128  }
 0x236   :  { %349 = vsyncadd [#allocation3], 4294967168 }
 0x237   :  { %350 = dma.done.wait [#allocation5], 256  }
 0x238   :  { %351 = vsyncadd [#allocation5], 4294967040 }
 0x239   :  { %241 = vsyncpa [#allocation3], 1 }
 0x23a   :  { %242 = vsyncpa [#allocation5], 1 }

</bundles_post_ra>
